<compile_context>
chip_gen: v6e
topology: v6e:2x2x1
jax: 0.10.0
libtpu: 0.0.40
codegen_flags: <defaults>
</compile_context>

<pallas_src>
import functools

import jax
import jax.numpy as jnp
from jax.experimental import pallas as pl
from jax.experimental.pallas import tpu as pltpu


_LANE = 128
_VMEM_BUDGET = 40 * 1024 * 1024   # own-buffer budget (safe on v7x: 64 MiB physical)
_VMEM_LIMIT = 48 * 1024 * 1024    # scoped VMEM limit handed to Mosaic


def _xv_kernel(x_ref, v_ref, o_ref):
    """One (row-tile, head) step of XV_h = X @ V_h (bf16 MXU, f32 accumulation)."""
    o_ref[...] = jnp.dot(
        x_ref[...].astype(jnp.bfloat16), v_ref[...],
        preferred_element_type=jnp.float32).astype(o_ref.dtype)


def _mha_kernel(x_ref, w_ref, xv_ref, o_ref, *, tq, num_heads,
                n_real, n_pad, scale, eps):
    """One grid step = one tile of query rows; all heads handled in-body.

    x_ref : (Np, Dp) f32     full padded X, resident (queries sliced from it)
    w_ref : (H, Dp, Dp) bf16
    xv_ref: (H, Np, Dp) bf16 precomputed X @ V_h
    o_ref : (TQ, Dp) f32
    """
    row0 = pl.multiple_of(pl.program_id(0) * tq, tq)
    xq_bf = x_ref[pl.ds(row0, tq), :].astype(jnp.bfloat16)   # (TQ, Dp) query tile
    xk_bf = x_ref[...].astype(jnp.bfloat16)                  # (Np, Dp) keys, once/tile

    if n_pad > n_real:
        # Keys beyond the real N are zero-padded rows of X; mask them out of the
        # softmax. (Static branch: zero cost when there is no padding.)
        key_ids = jax.lax.broadcasted_iota(jnp.int32, (1, n_pad), 1)
        key_bias = jnp.where(key_ids < n_real, 0.0, -1e30)
    else:
        key_bias = None

    def one_head(hh):
        w_h = w_ref[hh]                                       # (Dp, Dp)  bf16
        xv_h = xv_ref[hh]                                     # (Np, Dp)  bf16
        # Xq @ W_h with 1/sqrt(D) folded in (f32 MXU accumulation).
        xw = jnp.dot(xq_bf, w_h, preferred_element_type=jnp.float32) * scale
        # scores = (Xq W_h / sqrt(D)) @ Xk^T -- NT contraction, no explicit
        # transpose; xk_bf is head-loop-invariant so its layout is shared.
        s = jax.lax.dot_general(
            xw.astype(jnp.bfloat16), xk_bf, (((1,), (1,)), ((), ())),
            preferred_element_type=jnp.float32)               # (TQ, Np) f32
        if key_bias is not None:
            s = s + key_bias
        # softmax over keys (reference: softmax(scores, dim=1) + 1e-8).
        m = jnp.max(s, axis=-1, keepdims=True)
        e = jnp.exp(s - m)
        denom = jnp.sum(e, axis=-1, keepdims=True)
        inv = pl.reciprocal(denom, approx=False)              # exact; EUP has slack
        # Normalize AFTER the PV matmul; the +eps on the (N, N) weights becomes
        # eps * (column sums of XV_h over the keys).
        pv = jnp.dot(e.astype(jnp.bfloat16), xv_h,
                     preferred_element_type=jnp.float32)      # (TQ, Dp)
        colsum = jnp.sum(xv_h.astype(jnp.float32), axis=0, keepdims=True)
        return pv * inv + eps * colsum

    acc = one_head(0)                       # init from head 0: no zeros+add pass
    if num_heads > 1:
        if num_heads <= 4:
            for hh in range(1, num_heads):                    # static unroll
                acc = acc + one_head(hh)
        else:
            acc = jax.lax.fori_loop(                          # bounded live ranges
                1, num_heads, lambda hh, a: a + one_head(hh), acc)
    o_ref[...] = acc


def _vmem_bytes_estimate(n_pad, tq, dp, num_heads):
    """Rough per-step VMEM footprint of the main kernel (inputs double-buffered)."""
    est = 2 * n_pad * dp * 4                  # resident X (f32)
    est += 2 * num_heads * dp * dp * 2        # resident W  (bf16, all heads)
    est += 2 * num_heads * n_pad * dp * 2     # resident XV (bf16, all heads)
    est += 2 * tq * dp * 4                    # output tile (f32)
    est += n_pad * dp * 2                     # in-kernel bf16 copy of the keys
    est += tq * n_pad * 10                    # scores / e (f32) + e (bf16)
    est += 6 * tq * dp * 4                    # xw / pv / acc / misc temporaries
    return est


def _choose_tiles(n, dp, num_heads):
    """Pick (query-tile rows, padded N): tile multiple of 8, >=2 tiles when
    possible (v7x has 2 TensorCores), bounded padding waste, VMEM budget."""
    n_eff = max(n, 8)
    for tq in (1024, 512, 256, 128, 64, 32, 16, 8):
        n_pad = -(-n_eff // tq) * tq
        if tq != 8:
            if n_pad // tq < 2:                # want >= 2 query tiles
                continue
            if 2 * (n_pad - n) > n_eff:        # cap padded-row waste at ~50%
                continue
        if _vmem_bytes_estimate(n_pad, tq, dp, num_heads) > _VMEM_BUDGET:
            continue
        return tq, n_pad
    # Resident-X/XV model exceeds the budget even at tq=8; proceed anyway.
    # (Flash-style key/head tiling is the follow-up for that regime.)
    return 8, -(-n_eff // 8) * 8


def multi_head_attention(x, w_stack, v_stack):
    """x: (N, D) f32; w_stack/v_stack: (H, D, D) f32  ->  (N, D) f32."""
    n, d = x.shape
    num_heads = w_stack.shape[0]
    dp = -(-d // _LANE) * _LANE                 # lane-dense feature padding
    tq, n_pad = _choose_tiles(n, dp, num_heads)
    n_tiles = n_pad // tq

    # Zero padding is exact: padded rows/cols contribute 0 to every contraction
    # (padded keys are additionally masked out of the softmax in-kernel).
    x_pad = jnp.zeros((n_pad, dp), jnp.float32).at[:n, :d].set(x.astype(jnp.float32))
    w_pad = jnp.zeros((num_heads, dp, dp), jnp.float32).at[:, :d, :d].set(
        w_stack.astype(jnp.float32)).astype(jnp.bfloat16)
    v_pad = jnp.zeros((num_heads, dp, dp), jnp.float32).at[:, :d, :d].set(
        v_stack.astype(jnp.float32)).astype(jnp.bfloat16)

    cparams_xv = pltpu.CompilerParams(
        dimension_semantics=("parallel", "parallel"),
        vmem_limit_bytes=_VMEM_LIMIT)
    cparams_mha = pltpu.CompilerParams(
        dimension_semantics=("parallel",),
        vmem_limit_bytes=_VMEM_LIMIT)

    # --- Pass 1: XV_h = X @ V_h, computed ONCE (query-tile invariant). ---------
    xv = pl.pallas_call(
        _xv_kernel,
        out_shape=jax.ShapeDtypeStruct((num_heads, n_pad, dp), jnp.bfloat16),
        grid_spec=pltpu.PrefetchScalarGridSpec(
            num_scalar_prefetch=0,
            grid=(n_tiles, num_heads),           # head axis innermost: X tile reused
            in_specs=[
                pl.BlockSpec((tq, dp), lambda i, h: (i, 0)),
                pl.BlockSpec((None, dp, dp), lambda i, h: (h, 0, 0)),
            ],
            out_specs=pl.BlockSpec((None, tq, dp), lambda i, h: (h, i, 0)),
        ),
        compiler_params=cparams_xv,
    )(x_pad, v_pad)

    # --- Pass 2: per query tile: sum_h softmax(Xq W_h Xk^T / sqrt(D)) @ XV_h. ---
    kernel = functools.partial(
        _mha_kernel, tq=tq, num_heads=num_heads,
        n_real=n, n_pad=n_pad, scale=1.0 / (float(d) ** 0.5), eps=1e-8)

    out_pad = pl.pallas_call(
        kernel,
        out_shape=jax.ShapeDtypeStruct((n_pad, dp), jnp.float32),
        grid_spec=pltpu.PrefetchScalarGridSpec(
            num_scalar_prefetch=0,
            grid=(n_tiles,),
            in_specs=[
                pl.BlockSpec((n_pad, dp), lambda i: (0, 0)),               # X resident
                pl.BlockSpec((num_heads, dp, dp), lambda i: (0, 0, 0)),    # W, all heads
                pl.BlockSpec((num_heads, n_pad, dp), lambda i: (0, 0, 0)), # XV resident
            ],
            out_specs=pl.BlockSpec((tq, dp), lambda i: (i, 0)),            # lane-dense
        ),
        compiler_params=cparams_mha,
    )(x_pad, w_pad, xv)

    return out_pad[:n, :d]


def _reference(x, w_stack, v_stack):
    """Pure-JAX f32 reference mirroring the PyTorch forward."""
    n, d = x.shape
    out = jnp.zeros((n, d), jnp.float32)
    for h in range(w_stack.shape[0]):
        scores = x @ w_stack[h] @ x.T / (d ** 0.5)
        weights = jax.nn.softmax(scores, axis=1) + 1e-8
        out = out + weights @ x @ v_stack[h]
    return out


if __name__ == "__main__":
    # X: (N, D) feature matrix; H heads with (D, D) weight matrices each.
    # (The module's D comes from a dataframe; a small stand-in is used here.)
    N, D, H = 16, 32, 1

    key = jax.random.PRNGKey(0)
    kx, kw, kv = jax.random.split(key, 3)
    x = jax.random.normal(kx, (N, D), dtype=jnp.float32)
    # nn.Parameter(torch.randn(D, D) / 100) -> standard normal scaled by 1/100
    w_stack = jax.random.normal(kw, (H, D, D), dtype=jnp.float32) / 100.0
    v_stack = jax.random.normal(kv, (H, D, D), dtype=jnp.float32) / 100.0

    out = jax.block_until_ready(multi_head_attention(x, w_stack, v_stack))
    ref = _reference(x, w_stack, v_stack)

    assert out.shape == (N, D)
    # bf16 MXU operands with f32 accumulation: expected abs error O(1e-4) on
    # outputs of ~1e-2 magnitude; tolerance sized accordingly.
    max_err = float(jnp.max(jnp.abs(out - ref)))
    assert jnp.allclose(out, ref, atol=2e-3, rtol=2e-2), (
        f"mismatch vs reference, max abs err = {max_err}")
    print("KERNEL_OK")
</pallas_src>

<mosaic_0001>
module attributes {stable_mosaic.version = 11 : i64} {
  func.func @_xv_kernel(%arg0: i32, %arg1: i32, %arg2: memref<8x128xf32, #tpu.memory_space<vmem>>, %arg3: memref<1x128x128xbf16, #tpu.memory_space<vmem>>, %arg4: memref<1x8x128xbf16, #tpu.memory_space<vmem>>) attributes {dimension_semantics = [#tpu.dimension_semantics<parallel>, #tpu.dimension_semantics<parallel>], iteration_bounds = array<i64: 2, 1>, scalar_prefetch = 0 : i64, scratch_operands = 0 : i64, tpu.core_type = #tpu.core_type<tc>, window_params = [{transform_indices = @transform_0, window_bounds = array<i64: 8, 128>}, {transform_indices = @transform_1, window_bounds = array<i64: 1, 128, 128>}, {transform_indices = @transform_2, window_bounds = array<i64: 1, 8, 128>}]} {
    %c0 = arith.constant 0 : index
    %c0_0 = arith.constant 0 : index
    %0 = vector.load %arg2[%c0, %c0_0] : memref<8x128xf32, #tpu.memory_space<vmem>>, vector<8x128xf32>
    %1 = arith.truncf %0 : vector<8x128xf32> to vector<8x128xbf16>
    %c0_1 = arith.constant 0 : index
    %c0_2 = arith.constant 0 : index
    %c0_3 = arith.constant 0 : index
    %2 = vector.load %arg3[%c0_1, %c0_2, %c0_3] : memref<1x128x128xbf16, #tpu.memory_space<vmem>>, vector<1x128x128xbf16>
    %3 = vector.shape_cast %2 : vector<1x128x128xbf16> to vector<128x128xbf16>
    %cst = arith.constant dense<0.000000e+00> : vector<8x128xf32>
    %4 = tpu.matmul %1, %3, %cst {dimension_numbers = #tpu.dot_dimension_numbers<[1], [0], [0], [1], [0, 0, 1, 1], [], []>} : vector<8x128xbf16>, vector<128x128xbf16>, vector<8x128xf32> -> vector<8x128xf32>
    %5 = arith.truncf %4 : vector<8x128xf32> to vector<8x128xbf16>
    %c0_4 = arith.constant 0 : index
    %c0_5 = arith.constant 0 : index
    %c0_6 = arith.constant 0 : index
    %6 = vector.load %arg4[%c0_4, %c0_5, %c0_6] : memref<1x8x128xbf16, #tpu.memory_space<vmem>>, vector<1x8x128xbf16>
    %7 = vector.shape_cast %6 : vector<1x8x128xbf16> to vector<8x128xbf16>
    %8 = vector.shape_cast %5 : vector<8x128xbf16> to vector<1x8x128xbf16>
    tpu.vector_store %arg4[%c0_4, %c0_5, %c0_6], %8 {strides = array<i32>} : memref<1x8x128xbf16, #tpu.memory_space<vmem>>, vector<1x8x128xbf16>,
    return
  }
  func.func @transform_0(%arg0: i32, %arg1: i32) -> (i32, i32) {
    %c0_i32 = arith.constant 0 : i32
    %c0_i32_0 = arith.constant 0 : i32
    return %arg0, %c0_i32 : i32, i32
  }
  func.func @transform_1(%arg0: i32, %arg1: i32) -> (i32, i32, i32) {
    %c0_i32 = arith.constant 0 : i32
    %c0_i32_0 = arith.constant 0 : i32
    %c0_i32_1 = arith.constant 0 : i32
    return %arg1, %c0_i32, %c0_i32_0 : i32, i32, i32
  }
  func.func @transform_2(%arg0: i32, %arg1: i32) -> (i32, i32, i32) {
    %c0_i32 = arith.constant 0 : i32
    %c0_i32_0 = arith.constant 0 : i32
    return %arg1, %arg0, %c0_i32 : i32, i32, i32
  }
}

</mosaic_0001>

<bundles_post_ra>
// kernel: tpu_custom_call.1
= control target key start
LH: loop header
LB: loop body
LE: loop exit
PB: predicated region body
PF: predicated region fallthrough
CT: control target
= control target key end

     0   :  { %7 = vsyncpa [#allocation3], 0  ;;  %s892_s0 = inlined_call_operand.hbm [shape: f32[16,128], index: 0, kind: input, shape index: {}]   ;;  %s893_s1 = inlined_call_operand.hbm [shape: bf16[1,128,128], index: 1, kind: input, shape index: {}]   ;;  %s894_s2 = inlined_call_operand.hbm [shape: bf16[1,16,128], index: 2, kind: output, shape index: {}]  }
   0x1   :  { %9 = vsyncpa [#allocation3 + $0x1], 0 }
   0x2   :  { %10 = vsyncpa [#allocation6], 0 }
   0x3   :  { %11 = vsyncpa [#allocation4], 0 }
   0x4   :  { %13 = vsyncpa [#allocation4 + $0x1], 0  ;;  %s712_s9 = smov 0   ;;  %s714_s10 = smov 0  }
   0x5   :  { %s716_s11 = smov 0   ;;  %s718_s12 = smov 0  }
   0x6   :  { %s720_s13 = smov 0   ;;  %s722_s14 = smov 0  }
   0x7 LB: > { %s413_s15 = sadd.s32 4294967295, %s688_s14   ;;  %s414_s16 = sadd.s32 4294967294, %s688_s14   ;;  %s688_s14 = sphi %s722_s14, %s19_s14   ;;  %s684_s13 = sphi %s720_s13, %s912_s13   ;;  %s680_s12 = sphi %s718_s12, %s911_s12   ;;  %s676_s11 = sphi %s716_s11, %s910_s11   ;;  %s672_s10 = sphi %s714_s10, %s909_s10   ;;  %s668_s9 = sphi %s712_s9, %s908_s9  }
   0x8   : > { %p51_p0 = scmp.ne.s32.totalorder %s672_s10, %s668_s9  ;;  %p746_p1 = scmp.eq.s32.totalorder %s413_s15, 0 }
   0x9   : > { %p750_p2 = scmp.eq.s32.totalorder %s413_s15, 1  ;;  %p109_p3 = scmp.eq.s32.totalorder %s414_s16, 1 }
   0xa   : > { %p756_p4 = por %p746_p1, %p51_p0  ;;  %p415_p5 = scmp.ge.s32.totalorder %s688_s14, 1 }
   0xb   : > { %p761_p6 = por %p109_p3, %p51_p0  ;;  %p116_p7 = scmp.lt.s32.totalorder %s688_s14, 3 }
   0xc   : > { %s898_s19 = scalar_select %p756_p4, 1, 0 }
   0xd   : > { %s899_s20 = scalar_select %p761_p6, 1, 0 }
   0xe   : > { %p766_p8 = pnand %p415_p5, %p116_p7  ;;  %s690_s22 = smov [#allocation5]  }
   0xf   : > { %s131_s23 = sshll.u32 %s690_s22, 4  ;;  %s31_s25 = sadd.s32 1, %s684_s13  ;;  %s132_s23 = int_to_ptr.vmem [resolvable:$true] %s131_s23 }
  0x10   : > { %p473_p9 = pneg %p766_p8  ;;  %s561_s26 = scalar_lea.vmem %s132_s23, 1024 }
  0x11   : > { %p562_p13 = scmp.ne.s32.totalorder %s132_s23, %s561_s26  ;;  %p569_p5 = scmp.lt.s32.totalorder %s132_s23, %s132_s23 }
  0x12   : > { %p775_p11 = pnand %p473_p9, %p746_p1  ;;  %p570_p7 = scmp.lt.s32.totalorder %s561_s26, %s561_s26 }
  0x14   : > { %p552_p12 = pneg %p775_p11  ;;  %p571_p6 = por %p570_p7, %p569_p5 }
  0x16   : > { %p564_p0 = pnand %p562_p13, %p552_p12 }
  0x18   : > { %p565_p3 = pneg %p564_p0 }
  0x1a   : > { %p572_p4 = pnand %p571_p6, %p565_p3 }
  0x1c   : > { %575 = shalt.err (!%p572_p4)
}
  0x1d   : > { %s691_s27 = smov 64   ;;  %s692_s28 = smov 4  }
  0x1e   : > { %476 = dma.hbm_to_vmem [thread:$0]  (!%p775_p11), %s893_s1, 1024, %s132_s23, [#allocation6], %s691_s27, %s691_s27, %s692_s28  }
  0x1f   : > { %p33_p6 = scmp.ge.s32.totalorder %s31_s25, 2  ;;  %s38_s3 = sadd.s32 1, %s676_s11 }
  0x20   : > { %p45_p4 = scmp.ne.s32.totalorder %s676_s11, %s672_s10  ;;  %p46_p9 = scmp.eq.s32.totalorder %s688_s14, 0 }
  0x21   : > { %s914_s25 = smov (%p33_p6, %s31_s25), 0  ;;  %p486_p0 = scmp.lt.s32.totalorder %s688_s14, 2 }
  0x22   : > { %p793_p12 = por %p46_p9, %p45_p4  ;;  %p799_p13 = por %p750_p2, %p45_p4 }
  0x23   : > { %s35_s6 = ssub.s32 %s684_s13, %s914_s25  ;;  %s145_s7 = sand.u32 1, %s676_s11  }
  0x24   : > { %p36_p11 = scmp.eq.s32.totalorder %s35_s6, 0  ;;  %s418_s8 = sshll.u32 %s145_s7, 3 }
  0x25   : > { %s419_s16 = sshll.u32 %s684_s13, 7  ;;  %s149_s26 = scalar_lea.vmem [#allocation2], %s418_s8 }
  0x26   : > { %s808_s15 = scalar_select %p36_p11, %s676_s11, %s38_s3  }
  0x27   : > { %s154_s24 = scalar_lea.hbm %s892_s0, %s419_s16  ;;  %s156_s27 = sshll.u32 %s149_s26, 4  ;;  %s157_s27 = int_to_ptr.vmem [resolvable:$true] %s156_s27 }
  0x28   : > { %p816_p2 = pnand %p486_p0, %p793_p12  ;;  %s146_s28 = scalar_lea.sflag [#allocation3], %s145_s7 }
  0x29   : > { %s589_s29 = scalar_lea.vmem %s157_s27, 128  ;;  %s693_s30 = smov [#allocation2]  }
  0x2a   : > { %p578_p3 = pneg %p816_p2  ;;  %p590_p5 = scmp.ne.s32.totalorder %s157_s27, %s589_s29 }
  0x2b   : > { %s594_s3 = sshll.u32 %s693_s30, 4  ;;  %s595_s3 = int_to_ptr.vmem [resolvable:$false] %s594_s3 }
  0x2c   : > { %p592_p7 = pnand %p590_p5, %p578_p3  ;;  %s596_s6 = scalar_lea.vmem %s595_s3, 256 }
  0x2d   : > { %p597_p4 = scmp.lt.s32.totalorder %s157_s27, %s595_s3  ;;  %p598_p9 = scmp.lt.s32.totalorder %s596_s6, %s589_s29 }
  0x2e   : > { %p593_p6 = pneg %p592_p7 }
  0x2f   : > { %p599_p11 = por %p598_p9, %p597_p4 }
  0x31   : > { %p600_p10 = pnand %p599_p11, %p593_p6 }
  0x33   : > { %603 = shalt.err (!%p600_p10)
}
  0x34   : > { %480 = dma.hbm_to_vmem [thread:$0]  (!%p816_p2), %s154_s24, 128, %s157_s27, %s146_s28  }
  0x35   : > { %165 = sbr.rel (%p766_p8) target bundleno = 303 (0x12f), region = 28  ;;  %s827_s4 = sand.u32 (!%p766_p8), 1, %s672_s10  }
  0x36   : > { %s421_s7 = sshll.u32 (!%p766_p8), %s827_s4, 3  ;;  %s168_s8 = scalar_lea.sflag (!%p766_p8), [#allocation3], %s827_s4 }
  0x37   : > { %s171_s16 = scalar_lea.vmem (!%p766_p8), [#allocation2], %s421_s7  ;;  %p905_p12 = scmp.ne.s32.totalorder (!%p766_p8), %s898_s19, 0 }
  0x3a   : > { %655 = dma.done.wait (%p905_p12), %s168_s8, 128  }
  0x3b   : > { %657 = vsyncadd (%p905_p12), %s168_s8, 4294967168 }
  0x3c   : > { %659 = dma.done.wait (%p746_p1), [#allocation6], 1024  }
  0x3d   : > { %661 = vsyncadd (%p746_p1), [#allocation6], 4294966272  ;;  %v694_v0 = vmov 0.0   ;;  %vm695_vm0 = vmmov 0   ;;  %v542_v1 = vld [vmem:[#allocation5 + $0x38] sm:$0xff]   ;;  %v543_v2 = vld [vmem:[#allocation5 + $0x30] sm:$0xff]  }
  0x3e   : > { %445 = vmatprep.subr.bf16.mxu0 %v694_v0  ;;  %461 = vmatprep.mubr.msk.bf16.mxu0 %vm695_vm0, %v694_v0  ;;  %v544_v3 = vld [vmem:[#allocation5 + $0x28] sm:$0xff]   ;;  %v545_v4 = vld [vmem:[#allocation5 + $0x20] sm:$0xff]   ;;  %v546_v5 = vld [vmem:[#allocation5 + $0x18] sm:$0xff]   ;;  %s423_s17 = sshll.u32 %s827_s4, 2  ;;  %s433_s19 = sshll.u32 %s680_s12, 6 }
  0x3f   : > { %446 = vmatpush3.bf16.msra.mxu0 %v542_v1  ;;  %v547_v6 = vld [vmem:[#allocation5 + $0x10] sm:$0xff]   ;;  %v548_v7 = vld [vmem:[#allocation5 + $0x8] sm:$0xff]   ;;  %v549_v8 = vld [vmem:[#allocation5] sm:$0xff]   ;;  %s195_s21 = scalar_lea.vmem [#allocation7], %s423_s17  ;;  %s844_s26 = scalar_lea.hbm %s894_s2, %s433_s19 }
  0x40   : > { %447 = vmatprep.subr.bf16.mxu0 %v694_v0  ;;  %v197_v9 = vld [vmem:[%s171_s16] sm:$0xff]  ;;  %s321_s22 = sshll.u32 %s195_s21, 4  ;;  %s306_s27 = scalar_lea.sflag [#allocation4], %s827_s4  ;;  %s846_s22 = int_to_ptr.vmem [resolvable:$true] %s321_s22 }
  0x41   : > { %v198_v10 = vpack.c.bf16 %v197_v9, %v197_v9  ;;  %s604_s18 = scalar_lea.vmem %s846_s22, 64  ;;  %s696_s12 = smov [#allocation7]  }
  0x42   : > { %p605_p1 = scmp.ne.s32.totalorder %s846_s22, %s604_s18  ;;  %s608_s28 = sshll.u32 %s696_s12, 4  ;;  %s609_s28 = int_to_ptr.vmem [resolvable:$false] %s608_s28 }
  0x43   : > { %448 = vmatpush3.bf16.msra.mxu0 %v543_v2  ;;  %s610_s29 = scalar_lea.vmem %s609_s28, 128  ;;  %p611_p0 = scmp.lt.s32.totalorder %s846_s22, %s609_s28 }
  0x44   : > { %449 = vmatprep.subr.bf16.mxu0 %v694_v0  ;;  %p606_p8 = pnand %p605_p1, %p799_p13  ;;  %p612_p2 = scmp.lt.s32.totalorder %s610_s29, %s604_s18 }
  0x46   : > { %p607_p10 = pneg %p606_p8  ;;  %p613_p3 = por %p612_p2, %p611_p0 }
  0x47   : > { %450 = vmatpush3.bf16.msra.mxu0 %v544_v3 }
  0x48   : > { %451 = vmatprep.subr.bf16.mxu0 %v694_v0  ;;  %p614_p5 = pnand %p613_p3, %p607_p10 }
  0x4b   : > { %452 = vmatpush3.bf16.msra.mxu0 %v545_v4 }
  0x4c   : > { %453 = vmatprep.subr.bf16.mxu0 %v694_v0 }
  0x4f   : > { %454 = vmatpush3.bf16.msra.mxu0 %v546_v5 }
  0x50   : > { %455 = vmatprep.subr.bf16.mxu0 %v694_v0 }
  0x53   : > { %456 = vmatpush3.bf16.msra.mxu0 %v547_v6 }
  0x54   : > { %457 = vmatprep.subr.bf16.mxu0 %v694_v0 }
  0x57   : > { %458 = vmatpush3.bf16.msra.mxu0 %v548_v7 }
  0x58   : > { %459 = vmatprep.subr.bf16.mxu0 %v694_v0 }
  0x5b   : > { %460 = vmatpush3.bf16.msra.mxu0 %v549_v8 }
  0x5e   : > { %462 = vmatmul.mubr.bf16.vlgmr.msra.gmra.mxu0 %v198_v10 }
 0x11e   : > { %v297_v11 = vpop.f32.mrf.mxu0 }
 0x11f   : > { %v303_v12 = vpack.c.bf16 %v297_v11, %v297_v11 }
 0x120   : > { %v463_v13 = vpop.f32.mrf.mxu0 }
 0x121   : > { %304 = vst [vmem:[%s195_s21] sm:$0xf] %v303_v12 }
 0x122   : > { %v300_v14 = vpop.f32.mrf.mxu0 }
 0x123   : > { %617 = shalt.err (!%p614_p5)
}
 0x124   : > { %s618_s30 = scalar_lea.hbm %s844_s26, 64  ;;  %s622_s4 = scalar_lea.hbm %s894_s2, 128 }
 0x125   : > { %p619_p7 = scmp.ne.s32.totalorder %s844_s26, %s618_s30  ;;  %p623_p9 = scmp.lt.s32.totalorder %s844_s26, %s894_s2 }
 0x126   : > { %p624_p11 = scmp.lt.s32.totalorder %s622_s4, %s618_s30 }
 0x127   : > { %p620_p6 = pnand %p619_p7, %p799_p13 }
 0x128   : > { %p625_p12 = por %p624_p11, %p623_p9 }
 0x129   : > { %p621_p4 = pneg %p620_p6 }
 0x12b   : > { %p626_p1 = pnand %p625_p12, %p621_p4 }
 0x12d   : > { %629 = shalt.err (!%p626_p1)
}
 0x12e   : > { %471 = dma.vmem_to_hbm [thread:$0]  (%p799_p13), %s846_s22, 64, %s844_s26, %s306_s27   ;;  %v464_v15 = vpop.f32.mrf.mxu0 }
 0x12f PF: > { %s333_s16 = sand.u32 1, %s668_s9   ;;  %p906_p8 = scmp.ne.s32.totalorder %s899_s20, 0 }
 0x130   : > { %p907_p10 = scmp.ge.s32.totalorder %s688_s14, 2  ;;  %s334_s17 = scalar_lea.sflag [#allocation4], %s333_s16 }
 0x132   : > { %p482_p0 = pnand %p907_p10, %p906_p8 }
 0x134   : > { %p483_p2 = pneg %p482_p0 }
 0x136   : > { %663 = dma.done.wait (%p483_p2), %s334_s17, 64  }
 0x137   : > { %665 = vsyncadd (%p483_p2), %s334_s17, 4294967232  ;;  %s19_s14 = sadd.s32 1, %s688_s14   ;;  %s908_s9 = smov %s672_s10 }
 0x138   : > { %p16_p3 = scmp.ge.s32.totalorder %s19_s14, 4   ;;  %s909_s10 = smov %s676_s11 }
 0x139   : > { %s910_s11 = smov %s808_s15  ;;  %s911_s12 = smov %s684_s13 }
 0x13a   : > { %s912_s13 = smov %s914_s25  ;;  %18 = sbr.rel (!%p16_p3) target bundleno = 7 (0x7), region = 78 }
 0x13f   :  { %339 = vsyncpa [#allocation3], 1 }
 0x140   :  { %341 = vsyncpa [#allocation3 + $0x1], 1 }
 0x141   :  { %342 = vsyncpa [#allocation6], 1 }
 0x142   :  { %343 = vsyncpa [#allocation4], 1 }
 0x143   :  { %345 = vsyncpa [#allocation4 + $0x1], 1 }

</bundles_post_ra>
